<compile_context>
chip_gen: v5e
topology: v5e:2x2
jax: 0.10.0
libtpu: 0.0.40
codegen_flags: <defaults>
</compile_context>

<pallas_src>
import functools

import jax
import jax.numpy as jnp
from jax.experimental import pallas as pl
from jax.experimental.pallas import tpu as pltpu


def _label_smoothing_kernel(pred_ref, tgt_ref, loss_ref,
                            m_sc, s_sc, picked_sc, rowsum_sc,
                            *, smoothing, num_classes):
    ci = pl.program_id(1)
    tile_c = pred_ref.shape[-1]

    @pl.when(ci == 0)
    def _():
        m_sc[...] = jnp.full_like(m_sc, -jnp.inf)
        s_sc[...] = jnp.zeros_like(s_sc)
        picked_sc[...] = jnp.zeros_like(picked_sc)
        rowsum_sc[...] = jnp.zeros_like(rowsum_sc)

    x = pred_ref[...].astype(jnp.float32)                 # (tile_n, tile_c) f32
    tgt = tgt_ref[...]                                    # (tile_n, 1) int32

    # Global class index of each lane in this C-chunk; mask-based "gather".
    lane = jax.lax.broadcasted_iota(jnp.int32, x.shape, 1) + ci * tile_c
    hit = (lane == tgt).astype(jnp.float32)

    # Running row-sums (pred[target] and sum(pred)) over C chunks.
    picked_sc[...] += jnp.sum(x * hit, axis=-1, keepdims=True)
    rowsum_sc[...] += jnp.sum(x, axis=-1, keepdims=True)

    # Online-softmax state: running max + running sum(exp).
    m_old = m_sc[...]
    m_new = jnp.maximum(m_old, jnp.max(x, axis=-1, keepdims=True))
    s_sc[...] = s_sc[...] * jnp.exp(m_old - m_new) + jnp.sum(
        jnp.exp(x - m_new), axis=-1, keepdims=True)
    m_sc[...] = m_new

    @pl.when(ci == pl.num_programs(1) - 1)
    def _():
        confidence = 1.0 - smoothing
        lse = jnp.log(s_sc[...]) + m_sc[...]               # logsumexp per row
        # nll_loss    = -logprobs[target] = lse - pred[target]
        # smooth_loss = -mean(logprobs)   = lse - mean(pred)
        nll = lse - picked_sc[...]
        smooth = lse - rowsum_sc[...] * jnp.float32(1.0 / num_classes)
        loss_ref[...] = (confidence * nll + smoothing * smooth).astype(loss_ref.dtype)


# Double-buffered pred-tile byte budget; conservative enough for v7x (64 MiB
# physical VMEM) while still giving hundreds of rows per tile on all gens.
_VMEM_PRED_BUDGET = 20 * 1024 * 1024


def _choose_tiles(n, c, itemsize, row_gran):
    # C tile: keep the full vocab if it is small, else the largest 128-lane
    # power-of-two chunk that divides C (falls back to full C otherwise).
    tile_c = c
    if c > 8192:
        for cand in (8192, 4096, 2048, 1024, 512, 256, 128):
            if c % cand == 0:
                tile_c = cand
                break
    # Row tile: biggest multiple of row_gran whose double-buffered pred block
    # fits the budget.
    rows = _VMEM_PRED_BUDGET // (2 * tile_c * itemsize)
    rows = max(row_gran, (rows // row_gran) * row_gran)
    tile_n = n if n <= rows else rows
    return tile_n, tile_c


def label_smoothing_loss(pred, target, smoothing=0.1, tile_n=None, tile_c=None):
    """pred: (N, C) f32/bf16 logits, target: (N,) int. Returns scalar f32 loss."""
    n, c = pred.shape
    itemsize = jnp.dtype(pred.dtype).itemsize
    row_gran = 16 if pred.dtype == jnp.bfloat16 else 8
    auto_n, auto_c = _choose_tiles(n, c, itemsize, row_gran)
    if tile_n is None:
        tile_n = auto_n
    if tile_c is None:
        tile_c = auto_c
    assert (c % tile_c == 0) or (tile_c == c), "tile_c must divide C"

    # Row tiles may be padded at the boundary (pl.cdiv): padded rows only
    # write to discarded out-of-bounds output rows, so no masking is needed.
    grid = (pl.cdiv(n, tile_n), pl.cdiv(c, tile_c))
    tgt2d = target.astype(jnp.int32).reshape(n, 1)

    kernel = functools.partial(
        _label_smoothing_kernel, smoothing=float(smoothing), num_classes=c)

    # Explicit scoped-VMEM limit: double-buffered pred tiles + small side
    # buffers (target / output / scratch, lane-padded), with headroom.
    pred_bytes = 2 * tile_n * tile_c * itemsize
    side_bytes = 8 * tile_n * 128 * 4
    vmem_limit = max(32 << 20, (pred_bytes + side_bytes) * 5 // 4)

    per_row = pl.pallas_call(
        kernel,
        out_shape=jax.ShapeDtypeStruct((n, 1), jnp.float32),
        grid=grid,
        in_specs=[
            pl.BlockSpec((tile_n, tile_c), lambda i, ci: (i, ci)),
            pl.BlockSpec((tile_n, 1), lambda i, ci: (i, 0)),
        ],
        out_specs=pl.BlockSpec((tile_n, 1), lambda i, ci: (i, 0)),
        scratch_shapes=[pltpu.VMEM((tile_n, 1), jnp.float32)] * 4,
        compiler_params=pltpu.CompilerParams(
            dimension_semantics=("parallel", "arbitrary"),
            vmem_limit_bytes=int(vmem_limit),
        ),
    )(pred, tgt2d)

    return jnp.mean(per_row)


def _reference(pred, target, smoothing=0.1):
    confidence = 1.0 - smoothing
    logprobs = jax.nn.log_softmax(pred.astype(jnp.float32), axis=-1)
    nll_loss = -jnp.take_along_axis(logprobs, target[:, None], axis=-1)[:, 0]
    smooth_loss = -jnp.mean(logprobs, axis=-1)
    loss = confidence * nll_loss + smoothing * smooth_loss
    return jnp.mean(loss)


if __name__ == "__main__":
    key = jax.random.PRNGKey(0)
    k1, k2, k3, k4 = jax.random.split(key, 4)

    # Test 1: tiny f32 case (single tile, full-C block).
    N, C = 8, 32
    pred = jax.random.normal(k1, (N, C), dtype=jnp.float32)
    target = jax.random.randint(k2, (N,), 0, C, dtype=jnp.int32)
    out = jax.block_until_ready(label_smoothing_loss(pred, target, smoothing=0.1))
    ref = _reference(pred, target, smoothing=0.1)
    assert jnp.allclose(out, ref, atol=1e-5, rtol=1e-5), (out, ref)

    # Test 2: bf16 logits with forced small tiles so both grid axes
    # (multiple row tiles + online-softmax C chunks) are exercised.
    N2, C2 = 32, 256
    pred2 = jax.random.normal(k3, (N2, C2), dtype=jnp.float32).astype(jnp.bfloat16)
    target2 = jax.random.randint(k4, (N2,), 0, C2, dtype=jnp.int32)
    out2 = jax.block_until_ready(
        label_smoothing_loss(pred2, target2, smoothing=0.1, tile_n=16, tile_c=128))
    ref2 = _reference(pred2, target2, smoothing=0.1)
    assert jnp.allclose(out2, ref2, atol=1e-4, rtol=1e-4), (out2, ref2)

    print("KERNEL_OK")
</pallas_src>

<mosaic_0001>
module attributes {stable_mosaic.version = 11 : i64} {
  func.func @_label_smoothing_kernel(%arg0: i32, %arg1: i32, %arg2: memref<8x32xf32, #tpu.memory_space<vmem>>, %arg3: memref<8x1xi32, #tpu.memory_space<vmem>>, %arg4: memref<8x1xf32, #tpu.memory_space<vmem>>, %arg5: memref<8x1xf32, #tpu.memory_space<vmem>>, %arg6: memref<8x1xf32, #tpu.memory_space<vmem>>, %arg7: memref<8x1xf32, #tpu.memory_space<vmem>>, %arg8: memref<8x1xf32, #tpu.memory_space<vmem>>) attributes {dimension_semantics = [#tpu.dimension_semantics<parallel>, #tpu.dimension_semantics<arbitrary>], iteration_bounds = array<i64: 1, 1>, scalar_prefetch = 0 : i64, scratch_operands = 4 : i64, tpu.core_type = #tpu.core_type<tc>, window_params = [{transform_indices = @transform_0, window_bounds = array<i64: 8, 32>}, {transform_indices = @transform_1, window_bounds = array<i64: 8, 1>}, {transform_indices = @transform_2, window_bounds = array<i64: 8, 1>}]} {
    %c0_i32 = arith.constant 0 : i32
    %0 = arith.cmpi eq, %arg1, %c0_i32 : i32
    %1 = arith.extui %0 : i1 to i32
    %c0_i32_0 = arith.constant 0 : i32
    %2 = arith.cmpi ne, %1, %c0_i32_0 : i32
    scf.if %2 {
      %cst_25 = arith.constant 0xFF800000 : f32
      %43 = vector.broadcast %cst_25 : f32 to vector<8x1xf32>
      %c0_26 = arith.constant 0 : index
      %c0_27 = arith.constant 0 : index
      %44 = vector.load %arg5[%c0_26, %c0_27] : memref<8x1xf32, #tpu.memory_space<vmem>>, vector<8x1xf32>
      tpu.vector_store %arg5[%c0_26, %c0_27], %43 {strides = array<i32>} : memref<8x1xf32, #tpu.memory_space<vmem>>, vector<8x1xf32>,
      %cst_28 = arith.constant 0.000000e+00 : f32
      %45 = vector.broadcast %cst_28 : f32 to vector<8x1xf32>
      %c0_29 = arith.constant 0 : index
      %c0_30 = arith.constant 0 : index
      %46 = vector.load %arg6[%c0_29, %c0_30] : memref<8x1xf32, #tpu.memory_space<vmem>>, vector<8x1xf32>
      tpu.vector_store %arg6[%c0_29, %c0_30], %45 {strides = array<i32>} : memref<8x1xf32, #tpu.memory_space<vmem>>, vector<8x1xf32>,
      %cst_31 = arith.constant 0.000000e+00 : f32
      %47 = vector.broadcast %cst_31 : f32 to vector<8x1xf32>
      %c0_32 = arith.constant 0 : index
      %c0_33 = arith.constant 0 : index
      %48 = vector.load %arg7[%c0_32, %c0_33] : memref<8x1xf32, #tpu.memory_space<vmem>>, vector<8x1xf32>
      tpu.vector_store %arg7[%c0_32, %c0_33], %47 {strides = array<i32>} : memref<8x1xf32, #tpu.memory_space<vmem>>, vector<8x1xf32>,
      %cst_34 = arith.constant 0.000000e+00 : f32
      %49 = vector.broadcast %cst_34 : f32 to vector<8x1xf32>
      %c0_35 = arith.constant 0 : index
      %c0_36 = arith.constant 0 : index
      %50 = vector.load %arg8[%c0_35, %c0_36] : memref<8x1xf32, #tpu.memory_space<vmem>>, vector<8x1xf32>
      tpu.vector_store %arg8[%c0_35, %c0_36], %49 {strides = array<i32>} : memref<8x1xf32, #tpu.memory_space<vmem>>, vector<8x1xf32>,
    } else {
    }
    %c0 = arith.constant 0 : index
    %c0_1 = arith.constant 0 : index
    %3 = vector.load %arg2[%c0, %c0_1] : memref<8x32xf32, #tpu.memory_space<vmem>>, vector<8x32xf32>
    %c0_2 = arith.constant 0 : index
    %c0_3 = arith.constant 0 : index
    %4 = vector.load %arg3[%c0_2, %c0_3] : memref<8x1xi32, #tpu.memory_space<vmem>>, vector<8x1xi32>
    %5 = tpu.iota {dimensions = array<i32: 1>} : vector<8x32xi32>
    %c32_i32 = arith.constant 32 : i32
    %6 = arith.muli %arg1, %c32_i32 : i32
    %7 = vector.broadcast %6 : i32 to vector<8x32xi32>
    %8 = arith.addi %5, %7 : vector<8x32xi32>
    %9 = vector.broadcast %4 : vector<8x1xi32> to vector<8x32xi32>
    %10 = arith.cmpi eq, %8, %9 : vector<8x32xi32>
    %11 = arith.extui %10 : vector<8x32xi1> to vector<8x32xi32>
    %12 = arith.sitofp %11 : vector<8x32xi32> to vector<8x32xf32>
    %c0_4 = arith.constant 0 : index
    %c0_5 = arith.constant 0 : index
    %13 = vector.load %arg7[%c0_4, %c0_5] : memref<8x1xf32, #tpu.memory_space<vmem>>, vector<8x1xf32>
    %14 = arith.mulf %3, %12 : vector<8x32xf32>
    %cst = arith.constant dense<0.000000e+00> : vector<8xf32>
    %15 = vector.multi_reduction <add>, %14, %cst [1] : vector<8x32xf32> to vector<8xf32>
    %16 = vector.shape_cast %15 : vector<8xf32> to vector<8x1xf32>
    %17 = arith.addf %13, %16 : vector<8x1xf32>
    %c0_6 = arith.constant 0 : index
    %c0_7 = arith.constant 0 : index
    %18 = vector.load %arg7[%c0_6, %c0_7] : memref<8x1xf32, #tpu.memory_space<vmem>>, vector<8x1xf32>
    tpu.vector_store %arg7[%c0_6, %c0_7], %17 {strides = array<i32>} : memref<8x1xf32, #tpu.memory_space<vmem>>, vector<8x1xf32>,
    %c0_8 = arith.constant 0 : index
    %c0_9 = arith.constant 0 : index
    %19 = vector.load %arg8[%c0_8, %c0_9] : memref<8x1xf32, #tpu.memory_space<vmem>>, vector<8x1xf32>
    %cst_10 = arith.constant dense<0.000000e+00> : vector<8xf32>
    %20 = vector.multi_reduction <add>, %3, %cst_10 [1] : vector<8x32xf32> to vector<8xf32>
    %21 = vector.shape_cast %20 : vector<8xf32> to vector<8x1xf32>
    %22 = arith.addf %19, %21 : vector<8x1xf32>
    %c0_11 = arith.constant 0 : index
    %c0_12 = arith.constant 0 : index
    %23 = vector.load %arg8[%c0_11, %c0_12] : memref<8x1xf32, #tpu.memory_space<vmem>>, vector<8x1xf32>
    tpu.vector_store %arg8[%c0_11, %c0_12], %22 {strides = array<i32>} : memref<8x1xf32, #tpu.memory_space<vmem>>, vector<8x1xf32>,
    %c0_13 = arith.constant 0 : index
    %c0_14 = arith.constant 0 : index
    %24 = vector.load %arg5[%c0_13, %c0_14] : memref<8x1xf32, #tpu.memory_space<vmem>>, vector<8x1xf32>
    %cst_15 = arith.constant dense<0xFF800000> : vector<8xf32>
    %25 = vector.multi_reduction <maximumf>, %3, %cst_15 [1] : vector<8x32xf32> to vector<8xf32>
    %26 = vector.shape_cast %25 : vector<8xf32> to vector<8x1xf32>
    %27 = arith.maximumf %24, %26 : vector<8x1xf32>
    %c0_16 = arith.constant 0 : index
    %c0_17 = arith.constant 0 : index
    %28 = vector.load %arg6[%c0_16, %c0_17] : memref<8x1xf32, #tpu.memory_space<vmem>>, vector<8x1xf32>
    %29 = arith.subf %24, %27 : vector<8x1xf32>
    %30 = math.exp %29 : vector<8x1xf32>
    %31 = arith.mulf %28, %30 : vector<8x1xf32>
    %32 = vector.broadcast %27 : vector<8x1xf32> to vector<8x32xf32>
    %33 = arith.subf %3, %32 : vector<8x32xf32>
    %34 = math.exp %33 : vector<8x32xf32>
    %cst_18 = arith.constant dense<0.000000e+00> : vector<8xf32>
    %35 = vector.multi_reduction <add>, %34, %cst_18 [1] : vector<8x32xf32> to vector<8xf32>
    %36 = vector.shape_cast %35 : vector<8xf32> to vector<8x1xf32>
    %37 = arith.addf %31, %36 : vector<8x1xf32>
    %c0_19 = arith.constant 0 : index
    %c0_20 = arith.constant 0 : index
    %38 = vector.load %arg6[%c0_19, %c0_20] : memref<8x1xf32, #tpu.memory_space<vmem>>, vector<8x1xf32>
    tpu.vector_store %arg6[%c0_19, %c0_20], %37 {strides = array<i32>} : memref<8x1xf32, #tpu.memory_space<vmem>>, vector<8x1xf32>,
    %c0_21 = arith.constant 0 : index
    %c0_22 = arith.constant 0 : index
    %39 = vector.load %arg5[%c0_21, %c0_22] : memref<8x1xf32, #tpu.memory_space<vmem>>, vector<8x1xf32>
    tpu.vector_store %arg5[%c0_21, %c0_22], %27 {strides = array<i32>} : memref<8x1xf32, #tpu.memory_space<vmem>>, vector<8x1xf32>,
    %c0_i32_23 = arith.constant 0 : i32
    %40 = arith.cmpi eq, %arg1, %c0_i32_23 : i32
    %41 = arith.extui %40 : i1 to i32
    %c0_i32_24 = arith.constant 0 : i32
    %42 = arith.cmpi ne, %41, %c0_i32_24 : i32
    scf.if %42 {
      %c0_25 = arith.constant 0 : index
      %c0_26 = arith.constant 0 : index
      %43 = vector.load %arg6[%c0_25, %c0_26] : memref<8x1xf32, #tpu.memory_space<vmem>>, vector<8x1xf32>
      %44 = math.log %43 : vector<8x1xf32>
      %c0_27 = arith.constant 0 : index
      %c0_28 = arith.constant 0 : index
      %45 = vector.load %arg5[%c0_27, %c0_28] : memref<8x1xf32, #tpu.memory_space<vmem>>, vector<8x1xf32>
      %46 = arith.addf %44, %45 : vector<8x1xf32>
      %c0_29 = arith.constant 0 : index
      %c0_30 = arith.constant 0 : index
      %47 = vector.load %arg7[%c0_29, %c0_30] : memref<8x1xf32, #tpu.memory_space<vmem>>, vector<8x1xf32>
      %48 = arith.subf %46, %47 : vector<8x1xf32>
      %c0_31 = arith.constant 0 : index
      %c0_32 = arith.constant 0 : index
      %49 = vector.load %arg8[%c0_31, %c0_32] : memref<8x1xf32, #tpu.memory_space<vmem>>, vector<8x1xf32>
      %cst_33 = arith.constant 3.125000e-02 : f32
      %50 = vector.broadcast %cst_33 : f32 to vector<8x1xf32>
      %51 = arith.mulf %49, %50 : vector<8x1xf32>
      %52 = arith.subf %46, %51 : vector<8x1xf32>
      %cst_34 = arith.constant 0.899999976 : f32
      %53 = vector.broadcast %cst_34 : f32 to vector<8x1xf32>
      %54 = arith.mulf %53, %48 : vector<8x1xf32>
      %cst_35 = arith.constant 1.000000e-01 : f32
      %55 = vector.broadcast %cst_35 : f32 to vector<8x1xf32>
      %56 = arith.mulf %55, %52 : vector<8x1xf32>
      %57 = arith.addf %54, %56 : vector<8x1xf32>
      %c0_36 = arith.constant 0 : index
      %c0_37 = arith.constant 0 : index
      %58 = vector.load %arg4[%c0_36, %c0_37] : memref<8x1xf32, #tpu.memory_space<vmem>>, vector<8x1xf32>
      tpu.vector_store %arg4[%c0_36, %c0_37], %57 {strides = array<i32>} : memref<8x1xf32, #tpu.memory_space<vmem>>, vector<8x1xf32>,
    } else {
    }
    return
  }
  func.func @transform_0(%arg0: i32, %arg1: i32) -> (i32, i32) {
    %c0_i32 = arith.constant 0 : i32
    return %arg0, %arg1 : i32, i32
  }
  func.func @transform_1(%arg0: i32, %arg1: i32) -> (i32, i32) {
    %c0_i32 = arith.constant 0 : i32
    %c0_i32_0 = arith.constant 0 : i32
    return %arg0, %c0_i32 : i32, i32
  }
  func.func @transform_2(%arg0: i32, %arg1: i32) -> (i32, i32) {
    %c0_i32 = arith.constant 0 : i32
    %c0_i32_0 = arith.constant 0 : i32
    return %arg0, %c0_i32 : i32, i32
  }
}

</mosaic_0001>

<bundles_post_ra>
// kernel: tpu_custom_call.1
= control target key start
LH: loop header
LB: loop body
LE: loop exit
PB: predicated region body
PF: predicated region fallthrough
CT: control target
= control target key end

     0   :  { %vm35_vm0 = vcmask 261120   ;;  %vm15_vm1 = vcmask 7168   ;;  %v105_v1 = vmov -inf   ;;  %v106_v3 = vmov 0   ;;  %s145_s0 = inlined_call_operand.vmem [shape: f32[8,32], index: 0, kind: input, shape index: {}]   ;;  %s146_s1 = inlined_call_operand.vmem [shape: s32[8,1], index: 1, kind: input, shape index: {}]   ;;  %s147_s2 = inlined_call_operand.vmem [shape: f32[8,1], index: 2, kind: output, shape index: {}]  }
   0x1   :  { %v20_v0 = vld [vmem:[%s145_s0] sm:$0xff]  ;;  %16 = vst.msk [vmem:[#allocation2] sm:$0xff] %vm15_vm1, %v105_v1  ;;  %97 = vset.pattern.permute.xlu0 %v106_v3  ;;  %98 = vset.pattern.permute.xlu1 %v106_v3  ;;  %v107_v4 = vmov 0.0   ;;  %v22_v11 = vlaneseq }
   0x2   :  { %v49_v2 = vsel %vm35_vm0, %v20_v0, -inf  ;;  %17 = vst.msk [vmem:[#allocation3] sm:$0xff] %vm15_vm1, %v107_v4  ;;  %v21_v5 = vld [vmem:[%s146_s1] sm:$0xff]  ;;  %v43_v10 = vsel %vm35_vm0, %v20_v0, 0.0 }
   0x3   :  { %50 = vmax.xlane.f32.xlu0 %v49_v2  ;;  %18 = vst.msk [vmem:[#allocation4] sm:$0xff] %vm15_vm1, %v107_v4  ;;  %28 = vperm.xlu1 %98, %v21_v5   ;;  %v23_v13 = vand.u32 127, %v22_v11 }
   0x4   :  { %19 = vst.msk [vmem:[#allocation5] sm:$0xff] %vm15_vm1, %v107_v4  ;;  %44 = vadd.xlane.f32.xlu2 %v43_v10 }
   0x8   :  { %v48_v6 = vld [vmem:[#allocation2] sm:$0xff] }
   0x9   :  { %v53_v30 = vld [vmem:[#allocation3] sm:$0xff] }
   0xa   :  { %v33_v25 = vld [vmem:[#allocation4] sm:$0xff] }
   0xb   :  { %v42_v22 = vld [vmem:[#allocation5] sm:$0xff] }
  0x75   :  { %v29_v12 = vpop.permute.xlu1 %28 }
  0x76   :  { %v51_v7 = vpop.xlane.xlu0 %50  ;;  %vm30_vm2 = vcmp.eq.s32.totalorder %v23_v13, %v29_v12 }
  0x77   :  { %v52_v8 = vmax.f32 %v48_v6, %v51_v7  ;;  %v93_v14 = vsel %vm30_vm2, 1.0, %v107_v4  ;;  %v45_v23 = vpop.xlane.xlu2 %44 }
  0x78   :  { %v34_v15 = vmul.f32 %v93_v14, %v20_v0  ;;  %v46_v24 = vadd.f32 %v45_v23, %v42_v22 }
  0x79   :  { %v54_v9 = vsub.f32 %v48_v6, %v52_v8  ;;  %71 = vst.msk [vmem:[#allocation2] sm:$0xff] %vm15_vm1, %v52_v8  ;;  %60 = vperm.xlu0 %97, %v52_v8  }
  0x7a   :  { %v36_v16 = vsel %vm35_vm0, %v34_v15, 0.0  ;;  %47 = vst.msk [vmem:[#allocation5] sm:$0xff] %vm15_vm1, %v46_v24 }
  0x7b   :  { %37 = vadd.xlane.f32.xlu2 %v36_v16  ;;  %v55_v28 = vmul.f32 1.442695, %v54_v9 }
  0x80   :  { %v78_v38 = vld [vmem:[#allocation2] sm:$0xff] }
  0x81   :  { %v82_v36 = vld [vmem:[#allocation5] sm:$0xff] }
  0x82   :  { %v83_v41 = vmul.f32 0.03125, %v82_v36 }
  0xeb   :  { %v61_v17 = vpop.permute.xlu0 %60 }
  0xec   :  { %v63_v18 = vsub.f32 %v20_v0, %v61_v17 }
  0xee   :  { %v64_v19 = vmul.f32 1.442695, %v63_v18  ;;  %v38_v26 = vpop.xlane.xlu2 %37 }
  0xef   :  { %v39_v27 = vadd.f32 %v38_v26, %v33_v25 }
  0xf0   :  { %99 = vpow2.f32 %v64_v19 }
  0xf1   :  { %41 = vst.msk [vmem:[#allocation4] sm:$0xff] %vm15_vm1, %v39_v27  ;;  %101 = vpow2.f32 %v55_v28 }
  0xf6   :  { %v100_v20 = vpop.eup %99 }
  0xf7   :  { %v66_v21 = vsel %vm35_vm0, %v100_v20, 0.0  ;;  %v102_v29 = vpop.eup %101 }
  0xf8   :  { %67 = vadd.xlane.f32.xlu1 %v66_v21  ;;  %v57_v31 = vmul.f32 %v102_v29, %v53_v30  ;;  %v80_v39 = vld [vmem:[#allocation4] sm:$0xff] }
 0x16b   :  { %v68_v32 = vpop.xlane.xlu1 %67 }
 0x16c   :  { %v69_v33 = vadd.f32 %v68_v32, %v57_v31 }
 0x16e   :  { %70 = vst.msk [vmem:[#allocation3] sm:$0xff] %vm15_vm1, %v69_v33 }
 0x175   :  { %v75_v34 = vld [vmem:[#allocation3] sm:$0xff] }
 0x176   :  { %103 = vlog2.f32 %v75_v34 }
 0x17c   :  { %v104_v35 = vpop.eup %103 }
 0x17d   :  { %v77_v37 = vmul.f32 0.6931472, %v104_v35 }
 0x17f   :  { %v79_v40 = vadd.f32 %v78_v38, %v77_v37 }
 0x181   :  { %v84_v42 = vsub.f32 %v79_v40, %v83_v41  ;;  %v81_v43 = vsub.f32 %v79_v40, %v80_v39 }
 0x183   :  { %v86_v44 = vmul.f32 0.1, %v84_v42  ;;  %v85_v45 = vmul.f32 0.9, %v81_v43 }
 0x185   :  { %v87_v46 = vadd.f32 %v86_v44, %v85_v45 }
 0x187   :  { %88 = vst.msk [vmem:[%s147_s2] sm:$0xff] %vm15_vm1, %v87_v46 }

</bundles_post_ra>
